<compile_context>
chip_gen: v7x
topology: tpu7x:2x2x1
jax: 0.10.0
libtpu: 0.0.40
codegen_flags: <defaults>
</compile_context>

<pallas_src>
import functools

import jax
import jax.numpy as jnp
from jax import lax
from jax.experimental import pallas as pl
from jax.experimental.pallas import tpu as pltpu


# ---------------------------------------------------------------------------
# Kernel
# ---------------------------------------------------------------------------
def _double_conv_kernel(x_ref, w1_ref, sb1_ref, w2_ref, sb2_ref, o_ref, *,
                        fuse_conv1, fuse_conv2):
    """Nb batch images per grid step.

    x_ref   : (Nb, H, W*Cin)   f32 input images, lane axis = W*Cin
    w1_ref  : (3, W*Cin, W*Cmid) or (3*W*Cin, W*Cmid)   banded conv1 weights (bf16)
    sb1_ref : (2, W*Cmid)      f32 folded BN1 [scale ; bias], tiled W times
    w2_ref  : (3, W*Cmid, W*Cout) or (3*W*Cmid, W*Cout) banded conv2 weights (bf16)
    sb2_ref : (2, W*Cout)      f32 folded BN2 [scale ; bias], tiled W times
    o_ref   : (Nb, H, W*Cout)  f32 output, lane axis = W*Cout (lane-dense store)
    """
    Nb, H, WCin = x_ref.shape
    M = Nb * H
    mxu_dtype = w1_ref.dtype

    # Batch images stack along the sublane axis: (Nb, H, WC) -> (Nb*H, WC) is a
    # free row-major view (H is a multiple of 8 sublanes).
    x = x_ref[...].reshape(M, WCin)

    # Hoisted row iota + image-seam masks, shared by both convs (JAX does not
    # CSE broadcast_in_dim).  With Nb images stacked along rows, pltpu.roll
    # wraps across image seams, so mask on (row mod H), not on row.
    row = lax.broadcasted_iota(jnp.int32, (M, 1), 0)
    r_in_img = row % H
    is_top = r_in_img == 0
    is_bot = r_in_img == H - 1

    def conv3x3(inp, w_ref, fuse):
        # inp: (M, K) f32; w_ref: (3, K, N) or (3K, N).  Returns (M, N) f32.
        # dx taps / SAME padding along W live inside the banded weights; only
        # the row (dy) shifts and H padding are handled here (XLU roll + VPU
        # select, both off the MXU critical slot).
        up = jnp.where(is_top, 0.0, pltpu.roll(inp, 1, axis=0))       # inp[h-1]
        dn = jnp.where(is_bot, 0.0, pltpu.roll(inp, M - 1, axis=0))   # inp[h+1]
        if fuse:
            # K-fusion: one (M, 3K) x (3K, N) matmul fills the 256-deep
            # v6e/v7x MXU.  Only taken when K % 128 == 0 so the lane concat is
            # vreg-aligned.
            stacked = jnp.concatenate([up, inp, dn], axis=-1)
            return jnp.dot(stacked.astype(mxu_dtype), w_ref[...],
                           preferred_element_type=jnp.float32)
        acc = jnp.dot(inp.astype(mxu_dtype), w_ref[1],
                      preferred_element_type=jnp.float32)
        acc = acc + jnp.dot(up.astype(mxu_dtype), w_ref[0],
                            preferred_element_type=jnp.float32)
        acc = acc + jnp.dot(dn.astype(mxu_dtype), w_ref[2],
                            preferred_element_type=jnp.float32)
        return acc

    # conv1 + folded BN1 + LeakyReLU(0.2); epilogue in f32 (no bf16 VPU on v5e).
    y = conv3x3(x, w1_ref, fuse_conv1) * sb1_ref[0:1, :] + sb1_ref[1:2, :]
    y = jnp.where(y >= 0, y, 0.2 * y)

    # conv2 + folded BN2 + LeakyReLU(0.2).
    z = conv3x3(y, w2_ref, fuse_conv2) * sb2_ref[0:1, :] + sb2_ref[1:2, :]
    z = jnp.where(z >= 0, z, 0.2 * z)

    o_ref[...] = z.reshape(Nb, H, -1).astype(o_ref.dtype)   # lane-dense store


# ---------------------------------------------------------------------------
# One-time parameter preparation (weight-load time, NOT the per-call path)
# ---------------------------------------------------------------------------
def _band_weights(w_hwio, W):
    """(3,3,Ci,Co) HWIO kernel -> (3, W*Ci, W*Co) banded matmul weights.

    mats[dy][w_in*Ci + ci, w_out*Co + co] = w_hwio[dy, w_in - w_out + 1, ci, co]
    when |w_in - w_out| <= 1, else 0 — the dx taps and SAME padding along W are
    folded into the band structure.
    """
    kh, kw, Ci, Co = w_hwio.shape
    w_in = jnp.arange(W)[:, None]
    w_out = jnp.arange(W)[None, :]
    diff = w_in - w_out                              # (W, W)
    valid = jnp.abs(diff) <= 1
    dx = jnp.clip(diff + 1, 0, kw - 1)               # (W, W) tap index
    mats = []
    for dy in range(kh):
        taps = w_hwio[dy][dx]                        # (W, W, Ci, Co)
        taps = jnp.where(valid[:, :, None, None], taps, 0.0)
        mats.append(taps.transpose(0, 2, 1, 3).reshape(W * Ci, W * Co))
    return jnp.stack(mats, axis=0)                   # (3, W*Ci, W*Co)


def prepare_double_conv2_params(w1, s1, b1, w2, s2, b2, W,
                                mxu_dtype=jnp.bfloat16):
    """Build banded bf16 MXU weights and lane-tiled f32 folded-BN scale/bias.

    Called once when weights are loaded; the per-call path only DMAs the
    resulting arrays.
    """
    Cin, Cmid = w1.shape[-2], w1.shape[-1]
    Cout = w2.shape[-1]
    fuse1 = (W * Cin) % 128 == 0
    fuse2 = (W * Cmid) % 128 == 0

    w1b = _band_weights(w1, W).astype(mxu_dtype)     # (3, W*Cin,  W*Cmid)
    w2b = _band_weights(w2, W).astype(mxu_dtype)     # (3, W*Cmid, W*Cout)
    if fuse1:
        w1b = w1b.reshape(3 * W * Cin, W * Cmid)
    if fuse2:
        w2b = w2b.reshape(3 * W * Cmid, W * Cout)

    sb1 = jnp.stack([jnp.tile(s1, W), jnp.tile(b1, W)]).astype(jnp.float32)
    sb2 = jnp.stack([jnp.tile(s2, W), jnp.tile(b2, W)]).astype(jnp.float32)
    return dict(w1b=w1b, sb1=sb1, w2b=w2b, sb2=sb2, fuse1=fuse1, fuse2=fuse2)


# ---------------------------------------------------------------------------
# pallas_call wrapper
# ---------------------------------------------------------------------------
def _pick_batch_block(N, H, target_m=128):
    """Largest Nb with N % Nb == 0, Nb*H <= target_m, and (for v7x's dual
    TensorCores) at least 2 grid steps whenever N >= 2."""
    best = 1
    max_nb = max(1, target_m // max(H, 1))
    for nb in range(1, N + 1):
        if N % nb != 0 or nb > max_nb:
            continue
        if N >= 2 and (N // nb) < 2:
            continue
        best = nb
    return best


@functools.partial(jax.jit, static_argnames=("fuse1", "fuse2", "nb"))
def _double_conv2_call(x_nhwc, w1b, sb1, w2b, sb2, *, fuse1, fuse2, nb):
    N, H, W, Cin = x_nhwc.shape
    WCin = W * Cin
    WCmid = sb1.shape[1]
    WCout = sb2.shape[1]
    Cout = WCout // W

    # Free row-major reshape: lane axis becomes W*Cin.  Kept f32 — the fused
    # kernel reads the input exactly once, so a wrapper-side bf16 cast would
    # add an extra HBM pass; the bf16 cast happens in VMEM inside the kernel.
    x2 = x_nhwc.reshape(N, H, WCin)

    w1_block = w1b.shape
    w2_block = w2b.shape

    grid_spec = pltpu.PrefetchScalarGridSpec(
        num_scalar_prefetch=0,
        grid=(N // nb,),
        in_specs=[
            pl.BlockSpec((nb, H, WCin), lambda n: (n, 0, 0)),
            pl.BlockSpec(w1_block, lambda n: (0,) * len(w1_block)),
            pl.BlockSpec((2, WCmid), lambda n: (0, 0)),
            pl.BlockSpec(w2_block, lambda n: (0,) * len(w2_block)),
            pl.BlockSpec((2, WCout), lambda n: (0, 0)),
        ],
        out_specs=pl.BlockSpec((nb, H, WCout), lambda n: (n, 0, 0)),
    )

    out = pl.pallas_call(
        functools.partial(_double_conv_kernel,
                          fuse_conv1=fuse1, fuse_conv2=fuse2),
        out_shape=jax.ShapeDtypeStruct((N, H, WCout), jnp.float32),
        grid_spec=grid_spec,
        compiler_params=pltpu.CompilerParams(
            dimension_semantics=("parallel",)),
    )(x2, w1b, sb1, w2b, sb2)

    return out.reshape(N, H, W, Cout)


def double_conv2(x_nhwc, params):
    """x_nhwc: (N, H, W, Cin) f32.  params: from prepare_double_conv2_params.
    Returns (N, H, W, Cout) f32."""
    N, H, _, _ = x_nhwc.shape
    nb = _pick_batch_block(N, H)
    return _double_conv2_call(x_nhwc, params["w1b"], params["sb1"],
                              params["w2b"], params["sb2"],
                              fuse1=params["fuse1"], fuse2=params["fuse2"],
                              nb=nb)


# ---------------------------------------------------------------------------
# Pure-JAX reference (inference-mode BN), f32 throughout
# ---------------------------------------------------------------------------
def _ref_forward(x, w1, cb1, g1, be1, rm1, rv1, w2, cb2, g2, be2, rm2, rv2,
                 eps=1e-5):
    dn = ('NHWC', 'HWIO', 'NHWC')
    y = lax.conv_general_dilated(x, w1, (1, 1), 'SAME',
                                 dimension_numbers=dn) + cb1
    y = g1 * (y - rm1) / jnp.sqrt(rv1 + eps) + be1
    y = jnp.where(y >= 0, y, 0.2 * y)
    z = lax.conv_general_dilated(y, w2, (1, 1), 'SAME',
                                 dimension_numbers=dn) + cb2
    z = g2 * (z - rm2) / jnp.sqrt(rv2 + eps) + be2
    z = jnp.where(z >= 0, z, 0.2 * z)
    return z


if __name__ == "__main__":
    # Small shapes: batch=2, in_channels=4, mid=out=8, spatial=16x16.
    N, Cin, Cmid, Cout, H, W = 2, 4, 8, 8, 16, 16
    eps = 1e-5

    key = jax.random.PRNGKey(0)
    ks = jax.random.split(key, 13)

    x = jax.random.normal(ks[0], (N, H, W, Cin), jnp.float32)

    # Conv / BN parameters (deterministic random init).
    w1 = jax.random.normal(ks[1], (3, 3, Cin, Cmid), jnp.float32) * 0.1
    cb1 = jax.random.normal(ks[2], (Cmid,), jnp.float32) * 0.1
    g1 = jax.random.uniform(ks[3], (Cmid,), jnp.float32, 0.5, 1.5)
    be1 = jax.random.normal(ks[4], (Cmid,), jnp.float32) * 0.1
    rm1 = jax.random.normal(ks[5], (Cmid,), jnp.float32) * 0.1
    rv1 = jax.random.uniform(ks[6], (Cmid,), jnp.float32, 0.5, 1.5)

    w2 = jax.random.normal(ks[7], (3, 3, Cmid, Cout), jnp.float32) * 0.1
    cb2 = jax.random.normal(ks[8], (Cout,), jnp.float32) * 0.1
    g2 = jax.random.uniform(ks[9], (Cout,), jnp.float32, 0.5, 1.5)
    be2 = jax.random.normal(ks[10], (Cout,), jnp.float32) * 0.1
    rm2 = jax.random.normal(ks[11], (Cout,), jnp.float32) * 0.1
    rv2 = jnp.ones((Cout,), jnp.float32) * 0.9

    # Fold conv bias + BN (inference / running stats) into per-channel affine.
    s1 = g1 / jnp.sqrt(rv1 + eps)
    b1 = (cb1 - rm1) * s1 + be1
    s2 = g2 / jnp.sqrt(rv2 + eps)
    b2 = (cb2 - rm2) * s2 + be2

    # One-time prep (banded bf16 weights, tiled scale/bias).
    params = prepare_double_conv2_params(w1, s1, b1, w2, s2, b2, W)

    # Primary check at the module's small shapes (Nb=1, grid=2 -> keeps both
    # v7x TensorCores busy).
    out = jax.block_until_ready(double_conv2(x, params))
    ref = jax.block_until_ready(
        _ref_forward(x, w1, cb1, g1, be1, rm1, rv1,
                     w2, cb2, g2, be2, rm2, rv2, eps))
    assert out.shape == (N, H, W, Cout)
    # bf16 MXU inputs (f32 accumulation) -> looser tolerance than pure f32.
    assert jnp.allclose(out, ref, atol=5e-2, rtol=5e-2), \
        f"max abs err {jnp.max(jnp.abs(out - ref))}"

    # Secondary check: larger batch exercises the multi-image-per-step path
    # (Nb > 1) and the image-seam roll masks.
    x8 = jax.random.normal(ks[12], (8, H, W, Cin), jnp.float32)
    out8 = jax.block_until_ready(double_conv2(x8, params))
    ref8 = jax.block_until_ready(
        _ref_forward(x8, w1, cb1, g1, be1, rm1, rv1,
                     w2, cb2, g2, be2, rm2, rv2, eps))
    assert out8.shape == (8, H, W, Cout)
    assert jnp.allclose(out8, ref8, atol=5e-2, rtol=5e-2), \
        f"max abs err (batched) {jnp.max(jnp.abs(out8 - ref8))}"

    print("KERNEL_OK")
</pallas_src>

<mosaic_0001>
module attributes {stable_mosaic.version = 11 : i64} {
  func.func @_double_conv_kernel(%arg0: i32, %arg1: memref<1x16x64xf32, #tpu.memory_space<vmem>>, %arg2: memref<3x64x128xbf16, #tpu.memory_space<vmem>>, %arg3: memref<2x128xf32, #tpu.memory_space<vmem>>, %arg4: memref<384x128xbf16, #tpu.memory_space<vmem>>, %arg5: memref<2x128xf32, #tpu.memory_space<vmem>>, %arg6: memref<1x16x128xf32, #tpu.memory_space<vmem>>) attributes {dimension_semantics = [#tpu.dimension_semantics<parallel>], iteration_bounds = array<i64: 2>, scalar_prefetch = 0 : i64, scratch_operands = 0 : i64, tpu.core_type = #tpu.core_type<tc>, window_params = [{transform_indices = @transform_0, window_bounds = array<i64: 1, 16, 64>}, {pipeline_mode = #tpu.pipeline_mode<synchronous>, transform_indices = @transform_1, window_bounds = array<i64: 3, 64, 128>}, {pipeline_mode = #tpu.pipeline_mode<synchronous>, transform_indices = @transform_2, window_bounds = array<i64: 2, 128>}, {pipeline_mode = #tpu.pipeline_mode<synchronous>, transform_indices = @transform_3, window_bounds = array<i64: 384, 128>}, {pipeline_mode = #tpu.pipeline_mode<synchronous>, transform_indices = @transform_4, window_bounds = array<i64: 2, 128>}, {transform_indices = @transform_5, window_bounds = array<i64: 1, 16, 128>}]} {
    %c0 = arith.constant 0 : index
    %c0_0 = arith.constant 0 : index
    %c0_1 = arith.constant 0 : index
    %0 = vector.load %arg1[%c0, %c0_0, %c0_1] : memref<1x16x64xf32, #tpu.memory_space<vmem>>, vector<1x16x64xf32>
    %1 = vector.shape_cast %0 : vector<1x16x64xf32> to vector<16x64xf32>
    %2 = tpu.iota {dimensions = array<i32: 0>} : vector<16x1xi32>
    %c16_i32 = arith.constant 16 : i32
    %c0_i32 = arith.constant 0 : i32
    %3 = arith.cmpi eq, %c16_i32, %c0_i32 : i32
    %c1_i32 = arith.constant 1 : i32
    %4 = arith.select %3, %c1_i32, %c16_i32 : i32
    %5 = vector.broadcast %4 : i32 to vector<16x1xi32>
    %6 = arith.remsi %2, %5 : vector<16x1xi32>
    %c0_i32_2 = arith.constant 0 : i32
    %7 = vector.broadcast %c0_i32_2 : i32 to vector<16x1xi32>
    %8 = arith.cmpi ne, %6, %7 : vector<16x1xi32>
    %c0_i32_3 = arith.constant 0 : i32
    %9 = vector.broadcast %c0_i32_3 : i32 to vector<16x1xi32>
    %10 = arith.cmpi slt, %6, %9 : vector<16x1xi32>
    %c0_i32_4 = arith.constant 0 : i32
    %11 = arith.cmpi slt, %4, %c0_i32_4 : i32
    %12 = vector.broadcast %11 : i1 to vector<16x1xi1>
    %13 = vector.broadcast %12 : vector<16x1xi1> to vector<16x1xi1>
    %14 = arith.xori %10, %13 : vector<16x1xi1>
    %15 = arith.andi %14, %8 : vector<16x1xi1>
    %16 = vector.broadcast %4 : i32 to vector<16x1xi32>
    %17 = arith.addi %6, %16 : vector<16x1xi32>
    %18 = arith.select %15, %17, %6 : vector<16x1xi1>, vector<16x1xi32>
    %c0_i32_5 = arith.constant 0 : i32
    %19 = vector.broadcast %c0_i32_5 : i32 to vector<16x1xi32>
    %20 = arith.cmpi eq, %18, %19 : vector<16x1xi32>
    %c15_i32 = arith.constant 15 : i32
    %21 = vector.broadcast %c15_i32 : i32 to vector<16x1xi32>
    %22 = arith.cmpi eq, %18, %21 : vector<16x1xi32>
    %c1_i32_6 = arith.constant 1 : i32
    %23 = tpu.dynamic_rotate %1 by %c1_i32_6 dim 0 : vector<16x64xf32>, i32 -> vector<16x64xf32>
    %cst = arith.constant 0.000000e+00 : f32
    %24 = vector.shape_cast %20 : vector<16x1xi1> to vector<16x1xi1>
    %25 = vector.broadcast %24 : vector<16x1xi1> to vector<16x64xi1>
    %26 = vector.broadcast %cst : f32 to vector<16x64xf32>
    %27 = arith.select %25, %26, %23 : vector<16x64xi1>, vector<16x64xf32>
    %c15_i32_7 = arith.constant 15 : i32
    %28 = tpu.dynamic_rotate %1 by %c15_i32_7 dim 0 : vector<16x64xf32>, i32 -> vector<16x64xf32>
    %cst_8 = arith.constant 0.000000e+00 : f32
    %29 = vector.shape_cast %22 : vector<16x1xi1> to vector<16x1xi1>
    %30 = vector.broadcast %29 : vector<16x1xi1> to vector<16x64xi1>
    %31 = vector.broadcast %cst_8 : f32 to vector<16x64xf32>
    %32 = arith.select %30, %31, %28 : vector<16x64xi1>, vector<16x64xf32>
    %33 = arith.truncf %1 : vector<16x64xf32> to vector<16x64xbf16>
    %c1 = arith.constant 1 : index
    %c0_9 = arith.constant 0 : index
    %c0_10 = arith.constant 0 : index
    %34 = vector.load %arg2[%c1, %c0_9, %c0_10] : memref<3x64x128xbf16, #tpu.memory_space<vmem>>, vector<1x64x128xbf16>
    %35 = vector.shape_cast %34 : vector<1x64x128xbf16> to vector<64x128xbf16>
    %cst_11 = arith.constant dense<0.000000e+00> : vector<16x128xf32>
    %36 = tpu.matmul %33, %35, %cst_11 {dimension_numbers = #tpu.dot_dimension_numbers<[1], [0], [0], [1], [0, 0, 1, 1], [], []>} : vector<16x64xbf16>, vector<64x128xbf16>, vector<16x128xf32> -> vector<16x128xf32>
    %37 = arith.truncf %27 : vector<16x64xf32> to vector<16x64xbf16>
    %c0_12 = arith.constant 0 : index
    %c0_13 = arith.constant 0 : index
    %c0_14 = arith.constant 0 : index
    %38 = vector.load %arg2[%c0_12, %c0_13, %c0_14] : memref<3x64x128xbf16, #tpu.memory_space<vmem>>, vector<1x64x128xbf16>
    %39 = vector.shape_cast %38 : vector<1x64x128xbf16> to vector<64x128xbf16>
    %cst_15 = arith.constant dense<0.000000e+00> : vector<16x128xf32>
    %40 = tpu.matmul %37, %39, %cst_15 {dimension_numbers = #tpu.dot_dimension_numbers<[1], [0], [0], [1], [0, 0, 1, 1], [], []>} : vector<16x64xbf16>, vector<64x128xbf16>, vector<16x128xf32> -> vector<16x128xf32>
    %41 = arith.addf %36, %40 : vector<16x128xf32>
    %42 = arith.truncf %32 : vector<16x64xf32> to vector<16x64xbf16>
    %c2 = arith.constant 2 : index
    %c0_16 = arith.constant 0 : index
    %c0_17 = arith.constant 0 : index
    %43 = vector.load %arg2[%c2, %c0_16, %c0_17] : memref<3x64x128xbf16, #tpu.memory_space<vmem>>, vector<1x64x128xbf16>
    %44 = vector.shape_cast %43 : vector<1x64x128xbf16> to vector<64x128xbf16>
    %cst_18 = arith.constant dense<0.000000e+00> : vector<16x128xf32>
    %45 = tpu.matmul %42, %44, %cst_18 {dimension_numbers = #tpu.dot_dimension_numbers<[1], [0], [0], [1], [0, 0, 1, 1], [], []>} : vector<16x64xbf16>, vector<64x128xbf16>, vector<16x128xf32> -> vector<16x128xf32>
    %46 = arith.addf %41, %45 : vector<16x128xf32>
    %c0_19 = arith.constant 0 : index
    %c0_20 = arith.constant 0 : index
    %47 = vector.load %arg3[%c0_19, %c0_20] : memref<2x128xf32, #tpu.memory_space<vmem>>, vector<1x128xf32>
    %48 = vector.broadcast %47 : vector<1x128xf32> to vector<16x128xf32>
    %49 = arith.mulf %46, %48 : vector<16x128xf32>
    %c1_21 = arith.constant 1 : index
    %c0_22 = arith.constant 0 : index
    %50 = vector.load %arg3[%c1_21, %c0_22] : memref<2x128xf32, #tpu.memory_space<vmem>>, vector<1x128xf32>
    %51 = vector.broadcast %50 : vector<1x128xf32> to vector<16x128xf32>
    %52 = arith.addf %49, %51 : vector<16x128xf32>
    %cst_23 = arith.constant 0.000000e+00 : f32
    %53 = vector.broadcast %cst_23 : f32 to vector<16x128xf32>
    %54 = arith.cmpf oge, %52, %53 : vector<16x128xf32>
    %cst_24 = arith.constant 2.000000e-01 : f32
    %55 = vector.broadcast %cst_24 : f32 to vector<16x128xf32>
    %56 = arith.mulf %55, %52 : vector<16x128xf32>
    %57 = arith.select %54, %52, %56 : vector<16x128xi1>, vector<16x128xf32>
    %c1_i32_25 = arith.constant 1 : i32
    %58 = tpu.dynamic_rotate %57 by %c1_i32_25 dim 0 : vector<16x128xf32>, i32 -> vector<16x128xf32>
    %cst_26 = arith.constant 0.000000e+00 : f32
    %59 = vector.shape_cast %20 : vector<16x1xi1> to vector<16x1xi1>
    %60 = vector.broadcast %59 : vector<16x1xi1> to vector<16x128xi1>
    %61 = vector.broadcast %cst_26 : f32 to vector<16x128xf32>
    %62 = arith.select %60, %61, %58 : vector<16x128xi1>, vector<16x128xf32>
    %c15_i32_27 = arith.constant 15 : i32
    %63 = tpu.dynamic_rotate %57 by %c15_i32_27 dim 0 : vector<16x128xf32>, i32 -> vector<16x128xf32>
    %cst_28 = arith.constant 0.000000e+00 : f32
    %64 = vector.shape_cast %22 : vector<16x1xi1> to vector<16x1xi1>
    %65 = vector.broadcast %64 : vector<16x1xi1> to vector<16x128xi1>
    %66 = vector.broadcast %cst_28 : f32 to vector<16x128xf32>
    %67 = arith.select %65, %66, %63 : vector<16x128xi1>, vector<16x128xf32>
    %68 = tpu.concatenate %62, %57, %67 in 1 : vector<16x128xf32>, vector<16x128xf32>, vector<16x128xf32> -> vector<16x384xf32>
    %69 = arith.truncf %68 : vector<16x384xf32> to vector<16x384xbf16>
    %c0_29 = arith.constant 0 : index
    %c0_30 = arith.constant 0 : index
    %70 = vector.load %arg4[%c0_29, %c0_30] : memref<384x128xbf16, #tpu.memory_space<vmem>>, vector<384x128xbf16>
    %cst_31 = arith.constant dense<0.000000e+00> : vector<16x128xf32>
    %71 = tpu.matmul %69, %70, %cst_31 {dimension_numbers = #tpu.dot_dimension_numbers<[1], [0], [0], [1], [0, 0, 1, 1], [], []>} : vector<16x384xbf16>, vector<384x128xbf16>, vector<16x128xf32> -> vector<16x128xf32>
    %c0_32 = arith.constant 0 : index
    %c0_33 = arith.constant 0 : index
    %72 = vector.load %arg5[%c0_32, %c0_33] : memref<2x128xf32, #tpu.memory_space<vmem>>, vector<1x128xf32>
    %73 = vector.broadcast %72 : vector<1x128xf32> to vector<16x128xf32>
    %74 = arith.mulf %71, %73 : vector<16x128xf32>
    %c1_34 = arith.constant 1 : index
    %c0_35 = arith.constant 0 : index
    %75 = vector.load %arg5[%c1_34, %c0_35] : memref<2x128xf32, #tpu.memory_space<vmem>>, vector<1x128xf32>
    %76 = vector.broadcast %75 : vector<1x128xf32> to vector<16x128xf32>
    %77 = arith.addf %74, %76 : vector<16x128xf32>
    %cst_36 = arith.constant 0.000000e+00 : f32
    %78 = vector.broadcast %cst_36 : f32 to vector<16x128xf32>
    %79 = arith.cmpf oge, %77, %78 : vector<16x128xf32>
    %cst_37 = arith.constant 2.000000e-01 : f32
    %80 = vector.broadcast %cst_37 : f32 to vector<16x128xf32>
    %81 = arith.mulf %80, %77 : vector<16x128xf32>
    %82 = arith.select %79, %77, %81 : vector<16x128xi1>, vector<16x128xf32>
    %83 = vector.shape_cast %82 : vector<16x128xf32> to vector<1x16x128xf32>
    %c0_38 = arith.constant 0 : index
    %c0_39 = arith.constant 0 : index
    %c0_40 = arith.constant 0 : index
    %84 = vector.load %arg6[%c0_38, %c0_39, %c0_40] : memref<1x16x128xf32, #tpu.memory_space<vmem>>, vector<1x16x128xf32>
    tpu.vector_store %arg6[%c0_38, %c0_39, %c0_40], %83 {strides = array<i32>} : memref<1x16x128xf32, #tpu.memory_space<vmem>>, vector<1x16x128xf32>,
    return
  }
  func.func @transform_0(%arg0: i32) -> (i32, i32, i32) {
    %c0_i32 = arith.constant 0 : i32
    %c0_i32_0 = arith.constant 0 : i32
    %c0_i32_1 = arith.constant 0 : i32
    return %arg0, %c0_i32, %c0_i32_0 : i32, i32, i32
  }
  func.func @transform_1(%arg0: i32) -> (i32, i32, i32) {
    %c0_i32 = arith.constant 0 : i32
    %c0_i32_0 = arith.constant 0 : i32
    %c0_i32_1 = arith.constant 0 : i32
    %c0_i32_2 = arith.constant 0 : i32
    return %c0_i32, %c0_i32_0, %c0_i32_1 : i32, i32, i32
  }
  func.func @transform_2(%arg0: i32) -> (i32, i32) {
    %c0_i32 = arith.constant 0 : i32
    %c0_i32_0 = arith.constant 0 : i32
    %c0_i32_1 = arith.constant 0 : i32
    return %c0_i32, %c0_i32_0 : i32, i32
  }
  func.func @transform_3(%arg0: i32) -> (i32, i32) {
    %c0_i32 = arith.constant 0 : i32
    %c0_i32_0 = arith.constant 0 : i32
    %c0_i32_1 = arith.constant 0 : i32
    return %c0_i32, %c0_i32_0 : i32, i32
  }
  func.func @transform_4(%arg0: i32) -> (i32, i32) {
    %c0_i32 = arith.constant 0 : i32
    %c0_i32_0 = arith.constant 0 : i32
    %c0_i32_1 = arith.constant 0 : i32
    return %c0_i32, %c0_i32_0 : i32, i32
  }
  func.func @transform_5(%arg0: i32) -> (i32, i32, i32) {
    %c0_i32 = arith.constant 0 : i32
    %c0_i32_0 = arith.constant 0 : i32
    %c0_i32_1 = arith.constant 0 : i32
    return %arg0, %c0_i32, %c0_i32_0 : i32, i32, i32
  }
}

</mosaic_0001>

<bundles_post_ra>
// kernel: _double_conv2_call.1
= control target key start
LH: loop header
LB: loop body
LE: loop exit
PB: predicated region body
PF: predicated region fallthrough
CT: control target
= control target key end

     0   :  { %s1181_s18 = smov 0   ;;  %s1406_s0 = inlined_call_operand.vmem [shape: f32[2,16,64], index: 0, kind: input, shape index: {}]   ;;  %s1407_s1 = inlined_call_operand.vmem [shape: bf16[3,64,128], index: 1, kind: input, shape index: {}]   ;;  %s1408_s2 = inlined_call_operand.vmem [shape: f32[2,128], index: 2, kind: input, shape index: {}]   ;;  %s1409_s3 = inlined_call_operand.vmem [shape: bf16[384,128], index: 3, kind: input, shape index: {}]   ;;  %s1410_s4 = inlined_call_operand.vmem [shape: f32[2,128], index: 4, kind: input, shape index: {}]   ;;  %s1411_s5 = inlined_call_operand.vmem [shape: f32[2,16,128], index: 5, kind: output, shape index: {}]  }
   0x1 LB: > { %s903_s19 = sadd.s32 4294967295, %s1146_s18   ;;  %p907_p0 = scmp.ge.s32.totalorder %s1146_s18, 1  ;;  %s1146_s18 = sphi %s1181_s18, %s15_s18  }
   0x2   : > { %p187_p1 = scmp.lt.s32.totalorder %s1146_s18, 3 }
   0x4   : > { %p188_p2 = pnand %p907_p0, %p187_p1 }
   0x5   : > { %v1104_v0 = vld [vmem:[%s1407_s1] sm:$0xff] (!%p188_p2)   ;;  %v228_v1 = vlaneseq (!%p188_p2)  ;;  %v1148_v2 = vmov (!%p188_p2), 0.0   ;;  %v1105_v3 = vld [vmem:[%s1407_s1 + $0x8] sm:$0xff] (!%p188_p2)   ;;  %vm1149_vm0 = vmmov (!%p188_p2), 0   ;;  %p215_p3 = scmp.lt.s32.totalorder (!%p188_p2), %s903_s19, 1  ;;  %v1106_v6 = vld [vmem:[%s1407_s1 + $0x10] sm:$0xff] (!%p188_p2)  }
   0x6   : > { %191 = sbr.rel (%p188_p2) target bundleno = 537 (0x219), region = 40  ;;  %1029 = vmatprep.subr.bf16.mxu0 (!%p188_p2), %v1148_v2  ;;  %1037 = vmatprep.mubr.msk.bf16.mxu0 (!%p188_p2), %vm1149_vm0, %v1148_v2  ;;  %v1107_v12 = vld [vmem:[%s1407_s1 + $0x18] sm:$0xff] (!%p188_p2)   ;;  %vm324_vm3 = vcmask (!%p188_p2), 523264   ;;  %v1108_v17 = vld [vmem:[%s1407_s1 + $0x20] sm:$0xff] (!%p188_p2)   ;;  %v1109_v20 = vld [vmem:[%s1407_s1 + $0x28] sm:$0xff] (!%p188_p2)   ;;  %vm1150_vm9 = vmmov (!%p188_p2), 1  }
   0x7   : > { %1030 = vmatpush3.bf16.msra.mxu0 (!%p188_p2), %v1104_v0  ;;  %v1199_v4 = vshrl.u32 (!%p188_p2), %v228_v1, 7  ;;  %v1116_v18 = vld [vmem:[%s1409_s3 + $0x40] sm:$0xff] (!%p188_p2)   ;;  %v1118_v21 = vld [vmem:[%s1409_s3 + $0x48] sm:$0xff] (!%p188_p2)   ;;  %v1120_v23 = vld [vmem:[%s1409_s3 + $0x50] sm:$0xff] (!%p188_p2)  }
   0x8   : > { %1031 = vmatprep.subr.bf16.mxu0 (!%p188_p2), %v1148_v2  ;;  %998 = vmatprep.subr.bf16.mxu1 (!%p188_p2), %v1116_v18  ;;  %v1117_v19 = vld [vmem:[%s1409_s3] sm:$0xff] (!%p188_p2)   ;;  %v1119_v22 = vld [vmem:[%s1409_s3 + $0x8] sm:$0xff] (!%p188_p2)   ;;  %v1110_v24 = vld [vmem:[%s1407_s1 + $0x30] sm:$0xff] (!%p188_p2)  }
   0x9   : > { %v235_v5 = vand.u32 (!%p188_p2), 15, %v1199_v4  ;;  %vm261_vm2 = vcmp.lt.s32.totalorder (!%p188_p2), %v1199_v4, 1  ;;  %999 = vmatpush3.bf16.msra.mxu1 (!%p188_p2), %v1117_v19  ;;  %v1121_v25 = vld [vmem:[%s1409_s3 + $0x10] sm:$0xff] (!%p188_p2)   ;;  %v1122_v26 = vld [vmem:[%s1409_s3 + $0x58] sm:$0xff] (!%p188_p2)   ;;  %v230_v27 = vadd.s32 (!%p188_p2), 8, %v1199_v4  ;;  %v1124_v30 = vld [vmem:[%s1409_s3 + $0x60] sm:$0xff] (!%p188_p2)  }
   0xa   : > { %1000 = vmatprep.subr.bf16.mxu1 (!%p188_p2), %v1118_v21  ;;  %v1123_v28 = vld [vmem:[%s1409_s3 + $0x18] sm:$0xff] (!%p188_p2)   ;;  %v1125_v31 = vld [vmem:[%s1409_s3 + $0x20] sm:$0xff] (!%p188_p2)   ;;  %v1113_v34 = vld [vmem:[%s1407_s1 + $0x48] sm:$0xff] (!%p188_p2)   ;;  %vm272_vm4 = vcmp.lt.s32.totalorder (!%p188_p2), %v1199_v4, 7 }
   0xb   : > { %1032 = vmatpush3.bf16.msra.mxu0 (!%p188_p2), %v1105_v3  ;;  %vm1218_vm1 = vcmp.eq.s32.totalorder (!%p188_p2), %v235_v5, 0  ;;  %v1111_v29 = vld [vmem:[%s1407_s1 + $0x38] sm:$0xff] (!%p188_p2)   ;;  %v1112_v32 = vld [vmem:[%s1407_s1 + $0x40] sm:$0xff] (!%p188_p2)   ;;  %v242_v35 = vand.u32 (!%p188_p2), 15, %v230_v27  ;;  %v1114_v38 = vld [vmem:[%s1407_s1 + $0x50] sm:$0xff] (!%p188_p2)  }
   0xc   : > { %1033 = vmatprep.subr.bf16.mxu0 (!%p188_p2), %v1148_v2  ;;  %v1115_v41 = vld [vmem:[%s1407_s1 + $0x58] sm:$0xff] (!%p188_p2)   ;;  %v1126_v45 = vld [vmem:[%s1409_s3 + $0x68] sm:$0xff] (!%p188_p2)   ;;  %v1128_v47 = vld [vmem:[%s1409_s3 + $0x70] sm:$0xff] (!%p188_p2)  }
   0xd   : > { %s1417_s19 = smov (!%p215_p3, %s903_s19), 1  ;;  %1001 = vmatpush3.bf16.msra.mxu1 %v1119_v22  ;;  %vm1305_vm5 = vcmp.eq.s32.totalorder %v242_v35, 15  ;;  %v1127_v46 = vld [vmem:[%s1409_s3 + $0x28] sm:$0xff]   ;;  %v1129_v48 = vld [vmem:[%s1409_s3 + $0x30] sm:$0xff]   ;;  %v1130_v49 = vld [vmem:[%s1409_s3 + $0x78] sm:$0xff]  }
   0xe   : > { %s981_s26 = sshll.u32 %s1417_s19, 4  ;;  %1002 = vmatprep.subr.bf16.mxu1 %v1120_v23  ;;  %v1131_v50 = vld [vmem:[%s1409_s3 + $0x38] sm:$0xff]   ;;  %v943_v51 = vld [vmem:[%s1408_s2] ss:$0 sm:$0xff]  ;;  %v944_v53 = vld [vmem:[%s1408_s2 + $0x1] ss:$0 sm:$0xff] }
   0xf   : > { %s219_s29 = scalar_lea.vmem %s1406_s0, %s981_s26  ;;  %1034 = vmatpush3.bf16.msra.mxu0 %v1106_v6  ;;  %vm969_vm8 = vmneg %vm1218_vm1  ;;  %v1132_v9 = vld [vmem:[%s1409_s3 + $0x80] sm:$0xff]   ;;  %v1134_v4 = vld [vmem:[%s1409_s3 + $0x90] sm:$0xff]   ;;  %s224_s15 = scalar_lea.vmem %s1411_s5, %s981_s26 }
  0x10   : > { %v1214_v7 = vld [vmem:[%s219_s29] sm:$0xff]  ;;  %v1216_v8 = vld [vmem:[%s219_s29 + $0x8] sm:$0xff]  ;;  %1035 = vmatprep.subr.bf16.mxu0 %v1148_v2  ;;  %vm970_vm10 = vmpackc.low %vm1150_vm9, %vm969_vm8 }
  0x11   : > { %v259_v10 = vrot.slane %v1214_v7, 7  ;;  %v260_v11 = vrot.slane %v1216_v8, 7  ;;  %1003 = vmatpush3.bf16.msra.mxu1 %v1121_v25  ;;  %v281_v33 = vpack.c.bf16 %v1216_v8, %v1214_v7  ;;  %v270_v36 = vrot.slane %v1214_v7, 1  ;;  %v1137_v18 = vld [vmem:[%s1409_s3 + $0xa8] sm:$0xff]   ;;  %v1138_v19 = vld [vmem:[%s1409_s3 + $0xb0] sm:$0xff]   ;;  %vm973_vm11 = vmneg %vm1305_vm5 }
  0x12   : > { %1004 = vmatprep.subr.bf16.mxu1 %v1122_v26  ;;  %v271_v37 = vrot.slane %v1216_v8, 1  ;;  %vm974_vm12 = vmpackc.low %vm973_vm11, %vm1150_vm9 }
  0x13   : > { %v262_v13 = vsel %vm261_vm2, %v259_v10, %v260_v11  ;;  %v263_v14 = vsel %vm261_vm2, %v260_v11, %v259_v10  ;;  %1036 = vmatpush3.bf16.msra.mxu0 %v1107_v12 }
  0x14   : > { %v268_v15 = vsel %vm1218_vm1, 0.0, %v263_v14  ;;  %1041 = vmatprep.subr.bf16.mxu0 %v1148_v2  ;;  %v274_v40 = vsel %vm272_vm4, %v271_v37, %v270_v36  ;;  %v273_v42 = vsel %vm272_vm4, %v270_v36, %v271_v37 }
  0x15   : > { %v291_v16 = vpack.c.bf16 %v262_v13, %v268_v15  ;;  %1005 = vmatpush3.bf16.msra.mxu1 %v1123_v28  ;;  %v280_v43 = vsel %vm1305_vm5, 0.0, %v274_v40  ;;  %v1133_v15 = vld [vmem:[%s1409_s3 + $0x88] sm:$0xff]   ;;  %v977_v28 = vld [vmem:[%s1410_s4] ss:$0 sm:$0xff] }
  0x16   : > { %1006 = vmatprep.subr.bf16.mxu1 %v1124_v30  ;;  %v437_v44 = vpack.c.bf16 %v280_v43, %v273_v42 }
  0x17   : > { %1038 = vmatmul.mubr.msk.bf16.vlgmr.msra.gmra.mrb[0].mxu0 %vm324_vm3, %v291_v16  ;;  %v1135_v16 = vld [vmem:[%s1409_s3 + $0x98] sm:$0xff]  }
  0x18   : > { %1042 = vmatpush3.bf16.msra.mxu0 %v1108_v17  ;;  %1049 = vmatprep.mubr.msk.bf16.mxu0 %vm1149_vm0, %v1148_v2  ;;  %v1136_v17 = vld [vmem:[%s1409_s3 + $0xa0] sm:$0xff]  }
  0x19   : > { %1043 = vmatprep.subr.bf16.mxu0 %v1148_v2  ;;  %1007 = vmatpush3.bf16.msra.mxu1 %v1125_v31 }
  0x1a   : > { %1008 = vmatprep.subr.bf16.mxu1 %v1126_v45 }
  0x1c   : > { %1044 = vmatpush3.bf16.msra.mxu0 %v1109_v20  ;;  %v1139_v20 = vld [vmem:[%s1409_s3 + $0xb8] sm:$0xff]  }
  0x1d   : > { %1045 = vmatprep.subr.bf16.mxu0 %v1148_v2  ;;  %1009 = vmatpush3.bf16.msra.mxu1 %v1127_v46 }
  0x1e   : > { %1010 = vmatprep.subr.bf16.mxu1 %v1128_v47 }
  0x20   : > { %1046 = vmatpush3.bf16.msra.mxu0 %v1110_v24 }
  0x21   : > { %1047 = vmatprep.subr.bf16.mxu0 %v1148_v2  ;;  %1011 = vmatpush3.bf16.msra.mxu1 %v1129_v48 }
  0x22   : > { %1012 = vmatprep.subr.bf16.mxu1 %v1130_v49 }
  0x24   : > { %1048 = vmatpush3.bf16.msra.mxu0 %v1111_v29 }
  0x25   : > { %1053 = vmatprep.subr.bf16.mxu0 %v1148_v2  ;;  %1013 = vmatpush3.bf16.msra.mxu1 %v1131_v50 }
  0x26   : > { %1065 = vmatprep.subr.bf16.mxu1 %v1148_v2 }
  0x27   : > { %1050 = vmatmul.mubr.msk.bf16.vlgmr.msra.gmra.mrb[0].mxu0 %vm324_vm3, %v281_v33 }
  0x28   : > { %1054 = vmatpush3.bf16.msra.mxu0 %v1112_v32  ;;  %1061 = vmatprep.mubr.msk.bf16.mxu0 %vm1149_vm0, %v1148_v2 }
  0x29   : > { %1055 = vmatprep.subr.bf16.mxu0 %v1148_v2 }
  0x2c   : > { %1056 = vmatpush3.bf16.msra.mxu0 %v1113_v34 }
  0x2d   : > { %1057 = vmatprep.subr.bf16.mxu0 %v1148_v2 }
  0x30   : > { %1058 = vmatpush3.bf16.msra.mxu0 %v1114_v38 }
  0x31   : > { %1059 = vmatprep.subr.bf16.mxu0 %v1148_v2 }
  0x34   : > { %1060 = vmatpush3.bf16.msra.mxu0 %v1115_v41 }
  0x37   : > { %1062 = vmatmul.mubr.msk.bf16.vlgmr.msra.gmra.mrb[0].mxu0 %vm324_vm3, %v437_v44 }
 0x10a   : > { %v508_v52 = vpop.f32.mrb[0].mxu0 }
 0x10b   : > { %v522_v54 = vmul.f32 %v943_v51, %v508_v52  ;;  %v1063_v55 = vpop.f32.mrb[1].mxu0 }
 0x10c   : > { %v511_v56 = vpop.f32.mrb[2].mxu0 }
 0x10d   : > { %v529_v57 = vadd.f32 %v944_v53, %v522_v54  ;;  %v523_v58 = vmul.f32 %v943_v51, %v511_v56  ;;  %v1064_v59 = vpop.f32.mrb[3].mxu0 }
 0x10f   : > { %v530_v60 = vadd.f32 %v944_v53, %v523_v58  ;;  %vm531_vm6 = vcmp.ge.f32.partialorder %v529_v57, 0.0  ;;  %v533_v61 = vmul.f32 0.2, %v529_v57 }
 0x111   : > { %vm532_vm7 = vcmp.ge.f32.partialorder %v530_v60, 0.0  ;;  %v534_v62 = vmul.f32 0.2, %v530_v60  ;;  %v535_v63 = vsel %vm531_vm6, %v529_v57, %v533_v61 }
 0x112   : > { %v537_v1 = vrot.slane %v535_v63, 7  ;;  %v543_v5 = vrot.slane %v535_v63, 1 }
 0x113   : > { %v536_v0 = vsel %vm532_vm7, %v530_v60, %v534_v62 }
 0x114   : > { %v538_v3 = vrot.slane %v536_v0, 7  ;;  %v544_v6 = vrot.slane %v536_v0, 1  ;;  %v550_v7 = vpack.c.bf16 %v536_v0, %v535_v63 }
 0x116   : > { %v545_v8 = vsel %vm272_vm4, %v543_v5, %v544_v6  ;;  %v546_v10 = vsel %vm272_vm4, %v544_v6, %v543_v5  ;;  %776 = vmatprep.mubr.bf16.mxu1 %v550_v7  ;;  %v539_v11 = vsel %vm261_vm2, %v537_v1, %v538_v3  ;;  %v540_v12 = vsel %vm261_vm2, %v538_v3, %v537_v1 }
 0x117   : > { %v975_v13 = vpack.c.bf16 %v546_v10, %v545_v8  ;;  %v971_v14 = vpack.c.bf16 %v539_v11, %v540_v12 }
 0x119   : > { %972 = vmatmul.mubr.msk.bf16.vlgmr.msra.gmra.mrb[0].mxu1 %vm970_vm10, %v971_v14 }
 0x11a   : > { %1066 = vmatpush3.bf16.msra.mxu1 %v1132_v9  ;;  %1081 = vmatprep.mubr.msk.bf16.mxu1 %vm1149_vm0, %v1148_v2 }
 0x11b   : > { %1067 = vmatprep.subr.bf16.mxu1 %v1148_v2 }
 0x11e   : > { %1068 = vmatpush3.bf16.msra.mxu1 %v1133_v15 }
 0x11f   : > { %1069 = vmatprep.subr.bf16.mxu1 %v1148_v2 }
 0x122   : > { %1070 = vmatpush3.bf16.msra.mxu1 %v1134_v4 }
 0x123   : > { %1071 = vmatprep.subr.bf16.mxu1 %v1148_v2 }
 0x126   : > { %1072 = vmatpush3.bf16.msra.mxu1 %v1135_v16 }
 0x127   : > { %1073 = vmatprep.subr.bf16.mxu1 %v1148_v2 }
 0x12a   : > { %1074 = vmatpush3.bf16.msra.mxu1 %v1136_v17 }
 0x12b   : > { %1075 = vmatprep.subr.bf16.mxu1 %v1148_v2 }
 0x12e   : > { %1076 = vmatpush3.bf16.msra.mxu1 %v1137_v18 }
 0x12f   : > { %1077 = vmatprep.subr.bf16.mxu1 %v1148_v2 }
 0x132   : > { %1078 = vmatpush3.bf16.msra.mxu1 %v1138_v19 }
 0x133   : > { %1079 = vmatprep.subr.bf16.mxu1 %v1148_v2  ;;  %v978_v2 = vld [vmem:[%s1410_s4 + $0x1] ss:$0 sm:$0xff] }
 0x136   : > { %1080 = vmatpush3.bf16.msra.mxu1 %v1139_v20 }
 0x139   : > { %1082 = vmatmul.mubr.msk.bf16.vlgmr.msra.gmra.mrb[4].mxu1 %vm974_vm12, %v975_v13 }
 0x1ec   : > { %v1014_v21 = vpop.f32.mrb[0].mxu1 }
 0x1ed   : > { %v1015_v22 = vpop.f32.mrb[1].mxu1 }
 0x1ee   : > { %v1016_v23 = vadd.f32 %v1015_v22, %v1014_v21  ;;  %v1017_v24 = vpop.f32.mrb[2].mxu1 }
 0x1ef   : > { %v1018_v25 = vpop.f32.mrb[3].mxu1 }
 0x1f0   : > { %v1019_v26 = vadd.f32 %v1018_v25, %v1017_v24 }
 0x20c   : > { %v819_v27 = vpop.f32.mrb[4].mxu1 }
 0x20d   : > { %v820_v29 = vadd.f32 %v1016_v23, %v819_v27  ;;  %v1083_v30 = vpop.f32.mrb[5].mxu1 }
 0x20e   : > { %v822_v31 = vpop.f32.mrb[6].mxu1 }
 0x20f   : > { %v831_v32 = vmul.f32 %v977_v28, %v820_v29  ;;  %v823_v33 = vadd.f32 %v1019_v26, %v822_v31  ;;  %v1084_v34 = vpop.f32.mrb[7].mxu1 }
 0x211   : > { %v838_v35 = vadd.f32 %v978_v2, %v831_v32  ;;  %v832_v36 = vmul.f32 %v977_v28, %v823_v33 }
 0x213   : > { %vm840_vm13 = vcmp.ge.f32.partialorder %v838_v35, 0.0  ;;  %v842_v37 = vmul.f32 0.2, %v838_v35  ;;  %v839_v38 = vadd.f32 %v978_v2, %v832_v36 }
 0x215   : > { %v844_v39 = vsel %vm840_vm13, %v838_v35, %v842_v37  ;;  %vm841_vm14 = vcmp.ge.f32.partialorder %v839_v38, 0.0  ;;  %v843_v40 = vmul.f32 0.2, %v839_v38 }
 0x216   : > { %846 = vst [vmem:[%s224_s15] sm:$0xff] %v844_v39 }
 0x217   : > { %v845_v41 = vsel %vm841_vm14, %v839_v38, %v843_v40 }
 0x218   : > { %847 = vst [vmem:[%s224_s15 + $0x8] sm:$0xff] %v845_v41 }
 0x219 PF: > { %s15_s18 = sadd.s32 1, %s1146_s18  }
 0x21a   : > { %p12_p4 = scmp.ge.s32.totalorder %s15_s18, 4  }
 0x21c   :  { %14 = sbr.rel (!%p12_p4) target bundleno = 1 (0x1), region = 72 }

</bundles_post_ra>
